<compile_context>
chip_gen: v7x
topology: tpu7x:2x2x1
jax: 0.10.0
libtpu: 0.0.40
codegen_flags: <defaults>
</compile_context>

<pallas_src>
import jax
import jax.numpy as jnp
from jax.experimental import pallas as pl
from jax.experimental.pallas import tpu as pltpu


def _multihead_kernel(p_ref, x_ref, o_ref):
    # p_ref: (8, 8) f32 packed parameters, resident in VMEM across the grid:
    #   p[:, 0:2]  = [Wh1; Wh2] (8, 2)    p[:, 2]   = [bh1; bh2] (8,)
    #   p[0:2, 3:6] = W1        (2, 3)    p[0:2, 6] = b1         (2,)
    # x_ref: (3, TB)  -- x^T, batch on the lane axis (lane-dense).
    # o_ref: (8, TB)  -- rows 0:4 = head1^T, rows 4:8 = head2^T (lane-dense).
    p = p_ref[...]
    wh = p[:, 0:2]          # (8, 2)
    bh = p[:, 2:3]          # (8, 1)
    w1 = p[0:2, 3:6]        # (2, 3)
    b1 = p[0:2, 6:7]        # (2, 1)

    x = x_ref[...].astype(jnp.float32)                     # (3, TB)

    # feat^T = W1 @ x^T + b1 : K=3 contraction unrolled as broadcast FMAs (VPU).
    feat = (b1
            + w1[:, 0:1] * x[0:1]
            + w1[:, 1:2] * x[1:2]
            + w1[:, 2:3] * x[2:3])                         # (2, TB)

    # [head1; head2]^T = Wh @ feat^T + bh : K=2 contraction, dense (8, TB) slab.
    y = bh + wh[:, 0:1] * feat[0:1] + wh[:, 1:2] * feat[1:2]   # (8, TB)

    o_ref[...] = y.astype(o_ref.dtype)


def multihead_forward(x, w1, b1, wh1, bh1, wh2, bh2, *, block_b=65536):
    """Fused forward of MultiHeadTestNet.

    Args (PyTorch nn.Linear layouts):
      x:   (B, 3)
      w1:  (2, 3),  b1:  (2,)   -- self._linear
      wh1: (4, 2),  bh1: (4,)   -- self._head1
      wh2: (4, 2),  bh2: (4,)   -- self._head2
    Returns:
      (head1_out, head2_out), each (B, 4), dtype of x.
    """
    B = x.shape[0]
    dtype = x.dtype
    f32 = jnp.float32

    # Pack all 32 parameter scalars into one (8, 8) f32 slab.  Channels-first
    # compute means PyTorch's (out, in) weights are used as-is (no transpose).
    params = jnp.zeros((8, 8), f32)
    params = params.at[:, 0:2].set(jnp.concatenate([wh1, wh2], axis=0).astype(f32))
    params = params.at[:, 2].set(jnp.concatenate([bh1, bh2]).astype(f32))
    params = params.at[0:2, 3:6].set(w1.astype(f32))
    params = params.at[0:2, 6].set(b1.astype(f32))

    # Channels-first input: batch on the lane axis (lane-dense tiles).
    x_t = x.T                                              # (3, B)

    if B <= block_b:
        # One block spanning the whole lane axis: block dim == array dim is
        # always legal, so no padding (and no jnp.pad copy) regardless of B.
        tb, bp = B, B
    else:
        tb = max(128, (block_b // 128) * 128)              # lane tiles 128-aligned
        bp = pl.cdiv(B, tb) * tb
        if bp != B:
            # Rare ragged path: pad the transposed input (only 12 B/row of x).
            x_t = jnp.pad(x_t, ((0, 0), (0, bp - B)))
    grid = (bp // tb,)                                     # >= 2 steps when B > block_b

    out = pl.pallas_call(
        _multihead_kernel,
        out_shape=jax.ShapeDtypeStruct((8, bp), dtype),
        grid=grid,
        in_specs=[
            pl.BlockSpec((8, 8), lambda i: (0, 0)),        # params resident in VMEM
            pl.BlockSpec((3, tb), lambda i: (0, i)),       # x^T tiled along lanes
        ],
        out_specs=pl.BlockSpec((8, tb), lambda i: (0, i)), # dense (8, TB) output slab
        compiler_params=pltpu.CompilerParams(
            dimension_semantics=("parallel",),             # megacore split over batch
            vmem_limit_bytes=48 * 1024 * 1024,
        ),
    )(params, x_t)

    # Contiguous leading-axis row slices (NOT strided column slices), then the
    # wrapper-side transpose back to the PyTorch (B, 4) layout.
    y = out if bp == B else out[:, :B]
    return y[0:4].T, y[4:8].T


if __name__ == "__main__":
    key = jax.random.PRNGKey(0)
    ks = jax.random.split(key, 8)
    # Parameters in PyTorch nn.Linear layout: weight (out, in), bias (out,)
    w1 = jax.random.normal(ks[1], (2, 3), dtype=jnp.float32) * 0.5
    b1 = jax.random.normal(ks[2], (2,), dtype=jnp.float32) * 0.1
    wh1 = jax.random.normal(ks[3], (4, 2), dtype=jnp.float32) * 0.5
    bh1 = jax.random.normal(ks[4], (4,), dtype=jnp.float32) * 0.1
    wh2 = jax.random.normal(ks[5], (4, 2), dtype=jnp.float32) * 0.5
    bh2 = jax.random.normal(ks[6], (4,), dtype=jnp.float32) * 0.1

    def reference(xin):
        feat = xin @ w1.T + b1
        return feat @ wh1.T + bh1, feat @ wh2.T + bh2

    # Small batch (single block; lane dim == full array dim).
    B = 8
    x = jax.random.normal(ks[0], (B, 3), dtype=jnp.float32)
    h1, h2 = jax.block_until_ready(
        multihead_forward(x, w1, b1, wh1, bh1, wh2, bh2))
    r1, r2 = reference(x)
    assert h1.shape == (B, 4) and h2.shape == (B, 4)
    assert jnp.allclose(h1, r1, atol=1e-5, rtol=1e-5), "head1 mismatch (B=8)"
    assert jnp.allclose(h2, r2, atol=1e-5, rtol=1e-5), "head2 mismatch (B=8)"

    # Larger batch exercising the tiled, multi-step (grid > 1) path.
    B2 = 4096
    x2 = jax.random.normal(ks[7], (B2, 3), dtype=jnp.float32)
    g1, g2 = jax.block_until_ready(
        multihead_forward(x2, w1, b1, wh1, bh1, wh2, bh2, block_b=1024))
    s1, s2 = reference(x2)
    assert jnp.allclose(g1, s1, atol=1e-5, rtol=1e-5), "head1 mismatch (B=4096)"
    assert jnp.allclose(g2, s2, atol=1e-5, rtol=1e-5), "head2 mismatch (B=4096)"

    print("KERNEL_OK")
</pallas_src>

<mosaic_0001>
module attributes {stable_mosaic.version = 11 : i64} {
  func.func @_multihead_kernel(%arg0: i32, %arg1: memref<8x8xf32, #tpu.memory_space<vmem>>, %arg2: memref<3x8xf32, #tpu.memory_space<vmem>>, %arg3: memref<8x8xf32, #tpu.memory_space<vmem>>) attributes {dimension_semantics = [#tpu.dimension_semantics<parallel>], iteration_bounds = array<i64: 1>, scalar_prefetch = 0 : i64, scratch_operands = 0 : i64, tpu.core_type = #tpu.core_type<tc>, window_params = [{pipeline_mode = #tpu.pipeline_mode<synchronous>, transform_indices = @transform_0, window_bounds = array<i64: 8, 8>}, {transform_indices = @transform_1, window_bounds = array<i64: 3, 8>}, {transform_indices = @transform_2, window_bounds = array<i64: 8, 8>}]} {
    %c0 = arith.constant 0 : index
    %c0_0 = arith.constant 0 : index
    %0 = vector.load %arg1[%c0, %c0_0] : memref<8x8xf32, #tpu.memory_space<vmem>>, vector<8x8xf32>
    %1 = vector.extract_strided_slice %0 {offsets = [0, 0], sizes = [8, 2], strides = [1, 1]} : vector<8x8xf32> to vector<8x2xf32>
    %2 = vector.extract_strided_slice %0 {offsets = [0, 2], sizes = [8, 1], strides = [1, 1]} : vector<8x8xf32> to vector<8x1xf32>
    %3 = vector.extract_strided_slice %0 {offsets = [0, 3], sizes = [2, 3], strides = [1, 1]} : vector<8x8xf32> to vector<2x3xf32>
    %4 = vector.extract_strided_slice %0 {offsets = [0, 6], sizes = [2, 1], strides = [1, 1]} : vector<8x8xf32> to vector<2x1xf32>
    %c0_1 = arith.constant 0 : index
    %c0_2 = arith.constant 0 : index
    %5 = vector.load %arg2[%c0_1, %c0_2] : memref<3x8xf32, #tpu.memory_space<vmem>>, vector<3x8xf32>
    %6 = vector.extract_strided_slice %3 {offsets = [0, 0], sizes = [2, 1], strides = [1, 1]} : vector<2x3xf32> to vector<2x1xf32>
    %7 = vector.extract_strided_slice %5 {offsets = [0, 0], sizes = [1, 8], strides = [1, 1]} : vector<3x8xf32> to vector<1x8xf32>
    %8 = vector.broadcast %6 : vector<2x1xf32> to vector<2x8xf32>
    %9 = vector.broadcast %7 : vector<1x8xf32> to vector<2x8xf32>
    %10 = arith.mulf %8, %9 : vector<2x8xf32>
    %11 = vector.broadcast %4 : vector<2x1xf32> to vector<2x8xf32>
    %12 = arith.addf %11, %10 : vector<2x8xf32>
    %13 = vector.extract_strided_slice %3 {offsets = [0, 1], sizes = [2, 1], strides = [1, 1]} : vector<2x3xf32> to vector<2x1xf32>
    %14 = vector.extract_strided_slice %5 {offsets = [1, 0], sizes = [1, 8], strides = [1, 1]} : vector<3x8xf32> to vector<1x8xf32>
    %15 = vector.broadcast %13 : vector<2x1xf32> to vector<2x8xf32>
    %16 = vector.broadcast %14 : vector<1x8xf32> to vector<2x8xf32>
    %17 = arith.mulf %15, %16 : vector<2x8xf32>
    %18 = arith.addf %12, %17 : vector<2x8xf32>
    %19 = vector.extract_strided_slice %3 {offsets = [0, 2], sizes = [2, 1], strides = [1, 1]} : vector<2x3xf32> to vector<2x1xf32>
    %20 = vector.extract_strided_slice %5 {offsets = [2, 0], sizes = [1, 8], strides = [1, 1]} : vector<3x8xf32> to vector<1x8xf32>
    %21 = vector.broadcast %19 : vector<2x1xf32> to vector<2x8xf32>
    %22 = vector.broadcast %20 : vector<1x8xf32> to vector<2x8xf32>
    %23 = arith.mulf %21, %22 : vector<2x8xf32>
    %24 = arith.addf %18, %23 : vector<2x8xf32>
    %25 = vector.extract_strided_slice %1 {offsets = [0, 0], sizes = [8, 1], strides = [1, 1]} : vector<8x2xf32> to vector<8x1xf32>
    %26 = vector.extract_strided_slice %24 {offsets = [0, 0], sizes = [1, 8], strides = [1, 1]} : vector<2x8xf32> to vector<1x8xf32>
    %27 = vector.broadcast %25 : vector<8x1xf32> to vector<8x8xf32>
    %28 = vector.broadcast %26 : vector<1x8xf32> to vector<8x8xf32>
    %29 = arith.mulf %27, %28 : vector<8x8xf32>
    %30 = vector.broadcast %2 : vector<8x1xf32> to vector<8x8xf32>
    %31 = arith.addf %30, %29 : vector<8x8xf32>
    %32 = vector.extract_strided_slice %1 {offsets = [0, 1], sizes = [8, 1], strides = [1, 1]} : vector<8x2xf32> to vector<8x1xf32>
    %33 = vector.extract_strided_slice %24 {offsets = [1, 0], sizes = [1, 8], strides = [1, 1]} : vector<2x8xf32> to vector<1x8xf32>
    %34 = vector.broadcast %32 : vector<8x1xf32> to vector<8x8xf32>
    %35 = vector.broadcast %33 : vector<1x8xf32> to vector<8x8xf32>
    %36 = arith.mulf %34, %35 : vector<8x8xf32>
    %37 = arith.addf %31, %36 : vector<8x8xf32>
    %c0_3 = arith.constant 0 : index
    %c0_4 = arith.constant 0 : index
    %38 = vector.load %arg3[%c0_3, %c0_4] : memref<8x8xf32, #tpu.memory_space<vmem>>, vector<8x8xf32>
    tpu.vector_store %arg3[%c0_3, %c0_4], %37 {strides = array<i32>} : memref<8x8xf32, #tpu.memory_space<vmem>>, vector<8x8xf32>,
    return
  }
  func.func @transform_0(%arg0: i32) -> (i32, i32) {
    %c0_i32 = arith.constant 0 : i32
    %c0_i32_0 = arith.constant 0 : i32
    %c0_i32_1 = arith.constant 0 : i32
    return %c0_i32, %c0_i32_0 : i32, i32
  }
  func.func @transform_1(%arg0: i32) -> (i32, i32) {
    %c0_i32 = arith.constant 0 : i32
    %c0_i32_0 = arith.constant 0 : i32
    return %c0_i32, %arg0 : i32, i32
  }
  func.func @transform_2(%arg0: i32) -> (i32, i32) {
    %c0_i32 = arith.constant 0 : i32
    %c0_i32_0 = arith.constant 0 : i32
    return %c0_i32, %arg0 : i32, i32
  }
}

</mosaic_0001>

<bundles_post_ra>
// kernel: tpu_custom_call.1
= control target key start
LH: loop header
LB: loop body
LE: loop exit
PB: predicated region body
PF: predicated region fallthrough
CT: control target
= control target key end

     0   :  { %7 = vsyncpa [#allocation3], 0  ;;  %s266_s0 = inlined_call_operand.hbm [shape: f32[8,8], index: 0, kind: input, shape index: {}]   ;;  %s267_s1 = inlined_call_operand.hbm [shape: f32[3,8], index: 1, kind: input, shape index: {}]   ;;  %s268_s2 = inlined_call_operand.hbm [shape: f32[8,8], index: 2, kind: output, shape index: {}]  }
   0x1   :  { %8 = vsyncpa [#allocation6], 0 }
   0x2   :  { %9 = vsyncpa [#allocation4], 0  ;;  %s205_s9 = smov [#allocation2]   ;;  %s206_s11 = smov [#allocation5]  }
   0x3   :  { %s16_s10 = sshll.u32 %s205_s9, 4  ;;  %s26_s12 = sshll.u32 %s206_s11, 4  ;;  %s17_s10 = int_to_ptr.vmem [resolvable:$true] %s16_s10  ;;  %s27_s12 = int_to_ptr.vmem [resolvable:$true] %s26_s12 }
   0x4   :  { %s133_s15 = scalar_lea.hbm %s266_s0, 128 }
   0x5   :  { %p134_p0 = scmp.ne.s32.totalorder %s266_s0, %s133_s15  ;;  %p137_p1 = scmp.lt.u32.totalorder %s133_s15, %s266_s0 }
   0x7   :  { %p139_p2 = pnand %p137_p1, %p134_p0 }
   0x9   :  { %142 = shalt.err (!%p139_p2)
}
   0xa   :  { %s143_s20 = scalar_lea.vmem %s17_s10, 128  ;;  %p148_p4 = scmp.lt.s32.totalorder %s17_s10, %s17_s10 }
   0xb   :  { %p144_p3 = scmp.ne.s32.totalorder %s17_s10, %s143_s20  ;;  %p149_p5 = scmp.lt.s32.totalorder %s143_s20, %s143_s20 }
   0xd   :  { %p150_p6 = por %p149_p5, %p148_p4 }
   0xf   :  { %p151_p7 = pnand %p150_p6, %p144_p3 }
  0x11   :  { %154 = shalt.err (!%p151_p7)
}
  0x12   :  { %19 = dma.hbm_to_vmem [thread:$0]  %s266_s0, 128, %s17_s10, [#allocation3]  }
  0x13   :  { %s155_s25 = scalar_lea.hbm %s267_s1, 64 }
  0x14   :  { %p156_p8 = scmp.ne.s32.totalorder %s267_s1, %s155_s25  ;;  %p159_p9 = scmp.lt.u32.totalorder %s155_s25, %s267_s1 }
  0x16   :  { %p161_p10 = pnand %p159_p9, %p156_p8 }
  0x18   :  { %164 = shalt.err (!%p161_p10)
}
  0x19   :  { %s165_s30 = scalar_lea.vmem %s27_s12, 64  ;;  %p170_p12 = scmp.lt.s32.totalorder %s27_s12, %s27_s12 }
  0x1a   :  { %p166_p11 = scmp.ne.s32.totalorder %s27_s12, %s165_s30  ;;  %p171_p13 = scmp.lt.s32.totalorder %s165_s30, %s165_s30 }
  0x1c   :  { %p172_p0 = por %p171_p13, %p170_p12 }
  0x1e   :  { %p173_p1 = pnand %p172_p0, %p166_p11 }
  0x20   :  { %176 = shalt.err (!%p173_p1)
}
  0x21   :  { %29 = dma.hbm_to_vmem [thread:$0]  %s267_s1, 64, %s27_s12, [#allocation6]  }
  0x22   :  { %199 = dma.done.wait [#allocation3], 128  }
  0x23   :  { %200 = vsyncadd [#allocation3], 4294967168 }
  0x24   :  { %201 = dma.done.wait [#allocation6], 64  }
  0x25   :  { %202 = vsyncadd [#allocation6], 4294967232  ;;  %v207_v0 = vmov 4   ;;  %v208_v1 = vmov 3   ;;  %v36_v2 = vld [vmem:[#allocation2] sm:$0xff]  ;;  %v209_v3 = vmov 5   ;;  %v43_v8 = vlaneseq }
  0x26   :  { %127 = vset.pattern.permute.xlu1 %v207_v0  ;;  %125 = vset.pattern.permute.xlu0 %v208_v1  ;;  %v210_v4 = vmov 6   ;;  %v211_v5 = vmov 0   ;;  %v212_v6 = vmov 2   ;;  %v213_v7 = vmov 1   ;;  %v37_v11 = vld [vmem:[#allocation5] sm:$0x7] }
  0x27   :  { %54 = vperm.xlu1 %127, %v36_v2   ;;  %40 = vperm.xlu0 %125, %v36_v2   ;;  %v44_v9 = vshrl.u32 %v43_v8, 7  ;;  %s214_s1 = smov [#allocation7]   ;;  %vm97_vm0 = vcmask 64512  }
  0x28   :  { %s105_s4 = sshll.u32 %s214_s1, 4  ;;  %s106_s4 = int_to_ptr.vmem [resolvable:$true] %s105_s4 }
  0x29   :  { %v45_v10 = vsub.s32 0, %v44_v9  ;;  %v59_v12 = vsub.s32 1, %v44_v9  ;;  %v69_v16 = vsub.s32 2, %v44_v9  ;;  %s177_s5 = scalar_lea.vmem %s106_s4, 128  ;;  %p182_p3 = scmp.lt.s32.totalorder %s106_s4, %s106_s4 }
  0x2a   :  { %p178_p2 = scmp.ne.s32.totalorder %s106_s4, %s177_s5  ;;  %p183_p4 = scmp.lt.s32.totalorder %s177_s5, %s177_s5 }
  0x2b   :  { %128 = vset.pattern.permute.xlu1 %v209_v3  ;;  %126 = vset.pattern.permute.xlu0 %v210_v4  ;;  %v46_v14 = vrot.slane %v37_v11, %v45_v10  ;;  %v60_v17 = vrot.slane %v37_v11, %v59_v12  ;;  %v70_v19 = vrot.slane %v37_v11, %v69_v16 }
  0x2c   :  { %64 = vperm.xlu1 %128, %v36_v2   ;;  %49 = vperm.xlu0 %126, %v36_v2   ;;  %p184_p5 = por %p183_p4, %p182_p3 }
  0x2e   :  { %p185_p6 = pnand %p184_p5, %p178_p2 }
  0x30   :  { %129 = vset.pattern.permute.xlu1 %v211_v5  ;;  %130 = vset.pattern.permute.xlu0 %v212_v6 }
  0x31   :  { %74 = vperm.xlu1 %129, %v36_v2   ;;  %83 = vperm.xlu0 %130, %v36_v2  }
  0x35   :  { %131 = vset.pattern.permute.xlu1 %v213_v7  ;;  %132 = vset.pattern.permute.xlu0 %v213_v7 }
  0x36   :  { %88 = vperm.xlu1 %131, %v36_v2  }
  0xa6   :  { %v55_v13 = vpop.permute.xlu1 %54  ;;  %v41_v15 = vpop.permute.xlu0 %40 }
  0xa7   :  { %v47_v18 = vmul.f32 %v46_v14, %v41_v15  ;;  %v61_v22 = vmul.f32 %v60_v17, %v55_v13 }
  0xab   :  { %v65_v20 = vpop.permute.xlu1 %64  ;;  %v50_v21 = vpop.permute.xlu0 %49 }
  0xac   :  { %v52_v23 = vadd.f32 %v50_v21, %v47_v18  ;;  %v71_v24 = vmul.f32 %v70_v19, %v65_v20 }
  0xae   :  { %v62_v25 = vadd.f32 %v61_v22, %v52_v23 }
  0xb0   :  { %v75_v26 = vpop.permute.xlu1 %74  ;;  %v72_v27 = vadd.f32 %v71_v24, %v62_v25  ;;  %v84_v29 = vpop.permute.xlu0 %83 }
  0xb2   :  { %v80_v28 = vrot.slane %v72_v27, %v45_v10  ;;  %v94_v31 = vrot.slane %v72_v27, %v59_v12 }
  0xb4   :  { %v81_v30 = vmul.f32 %v80_v28, %v75_v26 }
  0xb5   :  { %v89_v32 = vpop.permute.xlu1 %88 }
  0xb6   :  { %v95_v33 = vmul.f32 %v94_v31, %v89_v32  ;;  %v86_v34 = vadd.f32 %v84_v29, %v81_v30 }
  0xb8   :  { %v96_v35 = vadd.f32 %v95_v33, %v86_v34 }
  0xba   :  { %98 = vst.msk [vmem:[#allocation7] sm:$0xff] %vm97_vm0, %v96_v35 }
  0xbb   :  { %188 = shalt.err (!%p185_p6)
}
  0xbc   :  { %s189_s8 = scalar_lea.hbm %s268_s2, 128 }
  0xbd   :  { %p190_p7 = scmp.ne.s32.totalorder %s268_s2, %s189_s8  ;;  %p193_p8 = scmp.lt.u32.totalorder %s189_s8, %s268_s2 }
  0xbf   :  { %p195_p9 = pnand %p193_p8, %p190_p7 }
  0xc1   :  { %198 = shalt.err (!%p195_p9)
}
  0xc2   :  { %108 = dma.vmem_to_hbm [thread:$0]  %s106_s4, 128, %s268_s2, [#allocation4]  }
  0xc3   :  { %203 = dma.done.wait [#allocation4], 128  }
  0xc4   :  { %204 = vsyncadd [#allocation4], 4294967168 }
  0xc5   :  { %112 = vsyncpa [#allocation3], 1 }
  0xc6   :  { %113 = vsyncpa [#allocation6], 1 }
  0xc7   :  { %114 = vsyncpa [#allocation4], 1 }

</bundles_post_ra>
